<compile_context>
chip_gen: v7x
topology: tpu7x:2x2x1
jax: 0.10.0
libtpu: 0.0.40
codegen_flags: <defaults>
</compile_context>

<pallas_src>
import jax
import jax.numpy as jnp
from jax.experimental import pallas as pl
from jax.experimental.pallas import tpu as pltpu


def mlp_kernel(x_ref,
               w1_ref, b1_ref,
               w2_ref, b2_ref,
               w3_ref, b3_ref,
               w4_ref, b4_ref,
               o_ref):
    mm_dtype = w1_ref.dtype  # bf16 matmul operands, f32 accumulation

    # Layer 1: [tm, D] @ [D, 128] + [1, 128] -> ReLU   (bias/ReLU in f32)
    h = jnp.dot(x_ref[...], w1_ref[...], preferred_element_type=jnp.float32)
    h = jnp.maximum(h + b1_ref[...], 0.0)
    # Layer 2: [tm, 128] @ [128, 64] + [1, 64] -> ReLU
    h = jnp.dot(h.astype(mm_dtype), w2_ref[...],
                preferred_element_type=jnp.float32)
    h = jnp.maximum(h + b2_ref[...], 0.0)
    # Layer 3: [tm, 64] @ [64, 32] + [1, 32] -> ReLU
    h = jnp.dot(h.astype(mm_dtype), w3_ref[...],
                preferred_element_type=jnp.float32)
    h = jnp.maximum(h + b3_ref[...], 0.0)
    # Layer 4 (no activation): [tm, 32] @ [32, 1] + [1, 1]
    out = jnp.dot(h.astype(mm_dtype), w4_ref[...],
                  preferred_element_type=jnp.float32)
    o_ref[...] = (out + b4_ref[...]).astype(o_ref.dtype)


def car_price_predictor(x, params, *, tm=None, mm_dtype=jnp.bfloat16):
    """x: [B, input_dim] float32. Returns [B, 1] float32."""
    B, D = x.shape
    (w1, b1), (w2, b2), (w3, b3), (w4, b4) = params

    # ---- tile selection -------------------------------------------------
    if tm is None:
        tm = min(B, 512)          # big tile -> full MXU M passes, low overhead
    steps = -(-B // tm)           # ceil
    if steps > 1 and steps % 2 == 1:
        steps += 1                # even step count -> clean 2-TC split on v7x
    Bp = steps * tm

    # ---- pad batch (if needed) and cast matmul operands to bf16 ---------
    x_mm = x.astype(mm_dtype)
    if Bp != B:
        x_mm = jnp.pad(x_mm, ((0, Bp - B), (0, 0)))
    w1c, w2c, w3c, w4c = (w.astype(mm_dtype) for w in (w1, w2, w3, w4))
    # Biases stay f32 (bias add + ReLU happen in f32 inside the kernel).

    def full(shape):
        # Full-array block, constant index map -> stays resident in VMEM.
        return pl.BlockSpec(shape, lambda i: (0, 0))

    out = pl.pallas_call(
        mlp_kernel,
        out_shape=jax.ShapeDtypeStruct((Bp, 1), jnp.float32),
        grid_spec=pltpu.PrefetchScalarGridSpec(
            num_scalar_prefetch=0,
            grid=(steps,),
            in_specs=[
                pl.BlockSpec((tm, D), lambda i: (i, 0)),   # x batch tile
                full(w1c.shape), full(b1.shape),
                full(w2c.shape), full(b2.shape),
                full(w3c.shape), full(b3.shape),
                full(w4c.shape), full(b4.shape),
            ],
            out_specs=pl.BlockSpec((tm, 1), lambda i: (i, 0)),
        ),
        compiler_params=pltpu.CompilerParams(
            dimension_semantics=("parallel",)),
    )(x_mm, w1c, b1, w2c, b2, w3c, b3, w4c, b4)

    return out[:B] if Bp != B else out


def init_params(key, input_dim):
    """Deterministic init. Weights stored as [in, out]; biases as [1, out]."""
    dims = [(input_dim, 128), (128, 64), (64, 32), (32, 1)]
    params = []
    for idx, (din, dout) in enumerate(dims):
        kw, kb, key = jax.random.split(jax.random.fold_in(key, idx), 3)
        bound = 1.0 / jnp.sqrt(jnp.float32(din))  # PyTorch Linear default range
        w = jax.random.uniform(kw, (din, dout), jnp.float32, -bound, bound)
        b = jax.random.uniform(kb, (1, dout), jnp.float32, -bound, bound)
        params.append((w, b))
    return params


def reference_forward_f32(x, params):
    (w1, b1), (w2, b2), (w3, b3), (w4, b4) = params
    h = jnp.maximum(x @ w1 + b1, 0.0)
    h = jnp.maximum(h @ w2 + b2, 0.0)
    h = jnp.maximum(h @ w3 + b3, 0.0)
    return h @ w4 + b4


def reference_forward_bf16(x, params):
    """Same mixed precision as the kernel: bf16 matmul inputs, f32 accumulate."""
    bf = jnp.bfloat16
    h = x.astype(bf)
    for i, (w, b) in enumerate(params):
        h = jnp.dot(h, w.astype(bf), preferred_element_type=jnp.float32) + b
        if i < len(params) - 1:
            h = jnp.maximum(h, 0.0)
        h = h.astype(bf) if i < len(params) - 1 else h
    return h


if __name__ == "__main__":
    key = jax.random.PRNGKey(0)
    batch, input_dim = 16, 16

    # Mirror `X_train.astype('int32')` then cast to float for the Linear layers.
    kx, kp = jax.random.split(key)
    x_int = jax.random.randint(kx, (batch, input_dim), 0, 10, dtype=jnp.int32)
    x = x_int.astype(jnp.float32)

    params = init_params(kp, input_dim)

    out = car_price_predictor(x, params)
    out = jax.block_until_ready(out)

    assert out.shape == (batch, 1)

    # Tight check against a reference with identical mixed precision.
    ref_bf16 = reference_forward_bf16(x, params)
    assert jnp.allclose(out, ref_bf16, atol=1e-3, rtol=1e-3), \
        "mismatch vs bf16-matmul reference"

    # Loose sanity check against the full-f32 reference (bf16 rounding noise).
    ref_f32 = reference_forward_f32(x, params)
    assert jnp.allclose(out, ref_f32, atol=1e-1, rtol=1e-1), \
        "mismatch vs f32 reference"

    print("KERNEL_OK")
</pallas_src>

<mosaic_0001>
module attributes {stable_mosaic.version = 11 : i64} {
  func.func @mlp_kernel(%arg0: i32, %arg1: memref<16x16xbf16, #tpu.memory_space<vmem>>, %arg2: memref<16x128xbf16, #tpu.memory_space<vmem>>, %arg3: memref<1x128xf32, #tpu.memory_space<vmem>>, %arg4: memref<128x64xbf16, #tpu.memory_space<vmem>>, %arg5: memref<1x64xf32, #tpu.memory_space<vmem>>, %arg6: memref<64x32xbf16, #tpu.memory_space<vmem>>, %arg7: memref<1x32xf32, #tpu.memory_space<vmem>>, %arg8: memref<32x1xbf16, #tpu.memory_space<vmem>>, %arg9: memref<1x1xf32, #tpu.memory_space<vmem>>, %arg10: memref<16x1xf32, #tpu.memory_space<vmem>>) attributes {dimension_semantics = [#tpu.dimension_semantics<parallel>], iteration_bounds = array<i64: 1>, scalar_prefetch = 0 : i64, scratch_operands = 0 : i64, tpu.core_type = #tpu.core_type<tc>, window_params = [{transform_indices = @transform_0, window_bounds = array<i64: 16, 16>}, {pipeline_mode = #tpu.pipeline_mode<synchronous>, transform_indices = @transform_1, window_bounds = array<i64: 16, 128>}, {pipeline_mode = #tpu.pipeline_mode<synchronous>, transform_indices = @transform_2, window_bounds = array<i64: 1, 128>}, {pipeline_mode = #tpu.pipeline_mode<synchronous>, transform_indices = @transform_3, window_bounds = array<i64: 128, 64>}, {pipeline_mode = #tpu.pipeline_mode<synchronous>, transform_indices = @transform_4, window_bounds = array<i64: 1, 64>}, {pipeline_mode = #tpu.pipeline_mode<synchronous>, transform_indices = @transform_5, window_bounds = array<i64: 64, 32>}, {pipeline_mode = #tpu.pipeline_mode<synchronous>, transform_indices = @transform_6, window_bounds = array<i64: 1, 32>}, {pipeline_mode = #tpu.pipeline_mode<synchronous>, transform_indices = @transform_7, window_bounds = array<i64: 32, 1>}, {pipeline_mode = #tpu.pipeline_mode<synchronous>, transform_indices = @transform_8, window_bounds = array<i64: 1, 1>}, {transform_indices = @transform_9, window_bounds = array<i64: 16, 1>}]} {
    %c0 = arith.constant 0 : index
    %c0_0 = arith.constant 0 : index
    %0 = vector.load %arg1[%c0, %c0_0] : memref<16x16xbf16, #tpu.memory_space<vmem>>, vector<16x16xbf16>
    %c0_1 = arith.constant 0 : index
    %c0_2 = arith.constant 0 : index
    %1 = vector.load %arg2[%c0_1, %c0_2] : memref<16x128xbf16, #tpu.memory_space<vmem>>, vector<16x128xbf16>
    %cst = arith.constant dense<0.000000e+00> : vector<16x128xf32>
    %2 = tpu.matmul %0, %1, %cst {dimension_numbers = #tpu.dot_dimension_numbers<[1], [0], [0], [1], [0, 0, 1, 1], [], []>} : vector<16x16xbf16>, vector<16x128xbf16>, vector<16x128xf32> -> vector<16x128xf32>
    %c0_3 = arith.constant 0 : index
    %c0_4 = arith.constant 0 : index
    %3 = vector.load %arg3[%c0_3, %c0_4] : memref<1x128xf32, #tpu.memory_space<vmem>>, vector<1x128xf32>
    %4 = vector.broadcast %3 : vector<1x128xf32> to vector<16x128xf32>
    %5 = arith.addf %2, %4 : vector<16x128xf32>
    %cst_5 = arith.constant 0.000000e+00 : f32
    %6 = vector.broadcast %cst_5 : f32 to vector<16x128xf32>
    %7 = arith.maximumf %5, %6 : vector<16x128xf32>
    %8 = arith.truncf %7 : vector<16x128xf32> to vector<16x128xbf16>
    %c0_6 = arith.constant 0 : index
    %c0_7 = arith.constant 0 : index
    %9 = vector.load %arg4[%c0_6, %c0_7] : memref<128x64xbf16, #tpu.memory_space<vmem>>, vector<128x64xbf16>
    %cst_8 = arith.constant dense<0.000000e+00> : vector<16x64xf32>
    %10 = tpu.matmul %8, %9, %cst_8 {dimension_numbers = #tpu.dot_dimension_numbers<[1], [0], [0], [1], [0, 0, 1, 1], [], []>} : vector<16x128xbf16>, vector<128x64xbf16>, vector<16x64xf32> -> vector<16x64xf32>
    %c0_9 = arith.constant 0 : index
    %c0_10 = arith.constant 0 : index
    %11 = vector.load %arg5[%c0_9, %c0_10] : memref<1x64xf32, #tpu.memory_space<vmem>>, vector<1x64xf32>
    %12 = vector.broadcast %11 : vector<1x64xf32> to vector<16x64xf32>
    %13 = arith.addf %10, %12 : vector<16x64xf32>
    %cst_11 = arith.constant 0.000000e+00 : f32
    %14 = vector.broadcast %cst_11 : f32 to vector<16x64xf32>
    %15 = arith.maximumf %13, %14 : vector<16x64xf32>
    %16 = arith.truncf %15 : vector<16x64xf32> to vector<16x64xbf16>
    %c0_12 = arith.constant 0 : index
    %c0_13 = arith.constant 0 : index
    %17 = vector.load %arg6[%c0_12, %c0_13] : memref<64x32xbf16, #tpu.memory_space<vmem>>, vector<64x32xbf16>
    %cst_14 = arith.constant dense<0.000000e+00> : vector<16x32xf32>
    %18 = tpu.matmul %16, %17, %cst_14 {dimension_numbers = #tpu.dot_dimension_numbers<[1], [0], [0], [1], [0, 0, 1, 1], [], []>} : vector<16x64xbf16>, vector<64x32xbf16>, vector<16x32xf32> -> vector<16x32xf32>
    %c0_15 = arith.constant 0 : index
    %c0_16 = arith.constant 0 : index
    %19 = vector.load %arg7[%c0_15, %c0_16] : memref<1x32xf32, #tpu.memory_space<vmem>>, vector<1x32xf32>
    %20 = vector.broadcast %19 : vector<1x32xf32> to vector<16x32xf32>
    %21 = arith.addf %18, %20 : vector<16x32xf32>
    %cst_17 = arith.constant 0.000000e+00 : f32
    %22 = vector.broadcast %cst_17 : f32 to vector<16x32xf32>
    %23 = arith.maximumf %21, %22 : vector<16x32xf32>
    %24 = arith.truncf %23 : vector<16x32xf32> to vector<16x32xbf16>
    %c0_18 = arith.constant 0 : index
    %c0_19 = arith.constant 0 : index
    %25 = vector.load %arg8[%c0_18, %c0_19] : memref<32x1xbf16, #tpu.memory_space<vmem>>, vector<32x1xbf16>
    %cst_20 = arith.constant dense<0.000000e+00> : vector<16x1xf32>
    %26 = tpu.matmul %24, %25, %cst_20 {dimension_numbers = #tpu.dot_dimension_numbers<[1], [0], [0], [1], [0, 0, 1, 1], [], []>} : vector<16x32xbf16>, vector<32x1xbf16>, vector<16x1xf32> -> vector<16x1xf32>
    %c0_21 = arith.constant 0 : index
    %c0_22 = arith.constant 0 : index
    %27 = vector.load %arg9[%c0_21, %c0_22] : memref<1x1xf32, #tpu.memory_space<vmem>>, vector<1x1xf32>
    %28 = vector.broadcast %27 : vector<1x1xf32> to vector<16x1xf32>
    %29 = arith.addf %26, %28 : vector<16x1xf32>
    %c0_23 = arith.constant 0 : index
    %c0_24 = arith.constant 0 : index
    %30 = vector.load %arg10[%c0_23, %c0_24] : memref<16x1xf32, #tpu.memory_space<vmem>>, vector<16x1xf32>
    tpu.vector_store %arg10[%c0_23, %c0_24], %29 {strides = array<i32>} : memref<16x1xf32, #tpu.memory_space<vmem>>, vector<16x1xf32>,
    return
  }
  func.func @transform_0(%arg0: i32) -> (i32, i32) {
    %c0_i32 = arith.constant 0 : i32
    %c0_i32_0 = arith.constant 0 : i32
    return %arg0, %c0_i32 : i32, i32
  }
  func.func @transform_1(%arg0: i32) -> (i32, i32) {
    %c0_i32 = arith.constant 0 : i32
    %c0_i32_0 = arith.constant 0 : i32
    %c0_i32_1 = arith.constant 0 : i32
    return %c0_i32, %c0_i32_0 : i32, i32
  }
  func.func @transform_2(%arg0: i32) -> (i32, i32) {
    %c0_i32 = arith.constant 0 : i32
    %c0_i32_0 = arith.constant 0 : i32
    %c0_i32_1 = arith.constant 0 : i32
    return %c0_i32, %c0_i32_0 : i32, i32
  }
  func.func @transform_3(%arg0: i32) -> (i32, i32) {
    %c0_i32 = arith.constant 0 : i32
    %c0_i32_0 = arith.constant 0 : i32
    %c0_i32_1 = arith.constant 0 : i32
    return %c0_i32, %c0_i32_0 : i32, i32
  }
  func.func @transform_4(%arg0: i32) -> (i32, i32) {
    %c0_i32 = arith.constant 0 : i32
    %c0_i32_0 = arith.constant 0 : i32
    %c0_i32_1 = arith.constant 0 : i32
    return %c0_i32, %c0_i32_0 : i32, i32
  }
  func.func @transform_5(%arg0: i32) -> (i32, i32) {
    %c0_i32 = arith.constant 0 : i32
    %c0_i32_0 = arith.constant 0 : i32
    %c0_i32_1 = arith.constant 0 : i32
    return %c0_i32, %c0_i32_0 : i32, i32
  }
  func.func @transform_6(%arg0: i32) -> (i32, i32) {
    %c0_i32 = arith.constant 0 : i32
    %c0_i32_0 = arith.constant 0 : i32
    %c0_i32_1 = arith.constant 0 : i32
    return %c0_i32, %c0_i32_0 : i32, i32
  }
  func.func @transform_7(%arg0: i32) -> (i32, i32) {
    %c0_i32 = arith.constant 0 : i32
    %c0_i32_0 = arith.constant 0 : i32
    %c0_i32_1 = arith.constant 0 : i32
    return %c0_i32, %c0_i32_0 : i32, i32
  }
  func.func @transform_8(%arg0: i32) -> (i32, i32) {
    %c0_i32 = arith.constant 0 : i32
    %c0_i32_0 = arith.constant 0 : i32
    %c0_i32_1 = arith.constant 0 : i32
    return %c0_i32, %c0_i32_0 : i32, i32
  }
  func.func @transform_9(%arg0: i32) -> (i32, i32) {
    %c0_i32 = arith.constant 0 : i32
    %c0_i32_0 = arith.constant 0 : i32
    return %arg0, %c0_i32 : i32, i32
  }
}

</mosaic_0001>

<bundles_post_ra>
// kernel: tpu_custom_call.1
= control target key start
LH: loop header
LB: loop body
LE: loop exit
PB: predicated region body
PF: predicated region fallthrough
CT: control target
= control target key end

     0   :  { %v488_v0 = vmov 0.0   ;;  %vm489_vm0 = vmmov 0   ;;  %vm57_vm1 = vcmask 130048   ;;  %vm259_vm2 = vcmask 523264   ;;  %s629_s1 = inlined_call_operand.vmem [shape: bf16[16,128], index: 1, kind: input, shape index: {}]   ;;  %s630_s0 = inlined_call_operand.vmem [shape: bf16[16,16], index: 0, kind: input, shape index: {}]   ;;  %s631_s3 = inlined_call_operand.vmem [shape: bf16[128,64], index: 3, kind: input, shape index: {}]   ;;  %s632_s5 = inlined_call_operand.vmem [shape: bf16[64,32], index: 5, kind: input, shape index: {}]   ;;  %s633_s2 = inlined_call_operand.vmem [shape: f32[1,128], index: 2, kind: input, shape index: {}]   ;;  %s634_s4 = inlined_call_operand.vmem [shape: f32[1,64], index: 4, kind: input, shape index: {}]   ;;  %s635_s7 = inlined_call_operand.vmem [shape: bf16[32,1], index: 7, kind: input, shape index: {}]   ;;  %s636_s8 = inlined_call_operand.<no memory space> [shape: f32[1,1], index: 8, kind: input, shape index: {}]   ;;  %s637_s6 = inlined_call_operand.vmem [shape: f32[1,32], index: 6, kind: input, shape index: {}]   ;;  %s638_s9 = inlined_call_operand.vmem [shape: f32[16,1], index: 9, kind: output, shape index: {}]  }
   0x1   :  { %424 = vmatprep.subr.bf16.mxu0 %v488_v0  ;;  %v472_v1 = vld [vmem:[%s629_s1] sm:$0xff]   ;;  %426 = vmatprep.mubr.msk.bf16.mxu0 %vm489_vm0, %v488_v0  ;;  %v475_v4 = vld [vmem:[%s631_s3 + $0x8] sm:$0xff]   ;;  %v476_v5 = vld [vmem:[%s631_s3 + $0x10] sm:$0xff]   ;;  %v14_v37 = vstv %s636_s8  ;;  %vm330_vm3 = vcmask 261120   ;;  %vm375_vm4 = vcmask 7168  }
   0x2   :  { %v473_v2 = vld [vmem:[%s630_s0] sm:$0xff]   ;;  %430 = vmatprep.subr.bf16.mxu1 %v488_v0  ;;  %446 = vmatprep.mubr.msk.bf16.mxu1 %vm489_vm0, %v488_v0  ;;  %v477_v6 = vld [vmem:[%s631_s3 + $0x18] sm:$0xff]   ;;  %v479_v8 = vld [vmem:[%s631_s3 + $0x28] sm:$0xff]   ;;  %15 = vst [vmem:[#allocation2] sm:$0x1] %v14_v37 }
   0x3   :  { %425 = vmatpush3.bf16.msra.mxu0 %v472_v1  ;;  %v474_v3 = vld [vmem:[%s631_s3] sm:$0xff]   ;;  %v480_v9 = vld [vmem:[%s631_s3 + $0x30] sm:$0xff]   ;;  %v481_v10 = vld [vmem:[%s631_s3 + $0x38] sm:$0xff]  }
   0x4   :  { %450 = vmatprep.subr.bf16.mxu0 %v488_v0  ;;  %431 = vmatpush3.bf16.msra.mxu1 %v474_v3  ;;  %v478_v7 = vld [vmem:[%s631_s3 + $0x20] sm:$0xff]   ;;  %v483_v12 = vld [vmem:[%s632_s5 + $0x8] sm:$0xff]   ;;  %v484_v23 = vld [vmem:[%s632_s5 + $0x10] sm:$0xff]  }
   0x5   :  { %432 = vmatprep.subr.bf16.mxu1 %v488_v0  ;;  %v482_v11 = vld [vmem:[%s632_s5] sm:$0xff]   ;;  %v485_v24 = vld [vmem:[%s632_s5 + $0x18] sm:$0xff]   ;;  %v487_v36 = vld [vmem:[%s635_s7 + $0x8] sm:$0xff]  }
   0x6   :  { %427 = vmatmul.mubr.msk.bf16.vlgmr.msra.gmra.mrb[0].mxu0 %vm57_vm1, %v473_v2  ;;  %v382_v13 = vld [vmem:[%s633_s2] ss:$0 sm:$0xff] }
   0x7   :  { %458 = vmatprep.mubr.msk.bf16.mxu0 %vm489_vm0, %v488_v0  ;;  %451 = vmatpush3.bf16.msra.mxu0 %v482_v11  ;;  %v386_v25 = vld [vmem:[%s634_s4] ss:$0 sm:$0xff] }
   0x8   :  { %433 = vmatpush3.bf16.msra.mxu1 %v475_v4  ;;  %452 = vmatprep.subr.bf16.mxu0 %v488_v0  ;;  %v486_v35 = vld [vmem:[%s635_s7] sm:$0xff]  }
   0x9   :  { %434 = vmatprep.subr.bf16.mxu1 %v488_v0  ;;  %v395_v38 = vld [vmem:[%s637_s6] ss:$0 sm:$0xff] }
   0xa   :  { %v401_v48 = vld [vmem:[#allocation2] ss:$0 sm:$0xff] }
   0xb   :  { %453 = vmatpush3.bf16.msra.mxu0 %v483_v12 }
   0xc   :  { %435 = vmatpush3.bf16.msra.mxu1 %v476_v5  ;;  %454 = vmatprep.subr.bf16.mxu0 %v488_v0 }
   0xd   :  { %436 = vmatprep.subr.bf16.mxu1 %v488_v0 }
   0xf   :  { %455 = vmatpush3.bf16.msra.mxu0 %v484_v23 }
  0x10   :  { %437 = vmatpush3.bf16.msra.mxu1 %v477_v6  ;;  %456 = vmatprep.subr.bf16.mxu0 %v488_v0 }
  0x11   :  { %438 = vmatprep.subr.bf16.mxu1 %v488_v0 }
  0x13   :  { %457 = vmatpush3.bf16.msra.mxu0 %v485_v24 }
  0x14   :  { %439 = vmatpush3.bf16.msra.mxu1 %v478_v7  ;;  %462 = vmatprep.subr.bf16.mxu0 %v488_v0 }
  0x15   :  { %440 = vmatprep.subr.bf16.mxu1 %v488_v0 }
  0x18   :  { %441 = vmatpush3.bf16.msra.mxu1 %v479_v8 }
  0x19   :  { %442 = vmatprep.subr.bf16.mxu1 %v488_v0 }
  0x1c   :  { %443 = vmatpush3.bf16.msra.mxu1 %v480_v9 }
  0x1d   :  { %444 = vmatprep.subr.bf16.mxu1 %v488_v0 }
  0x20   :  { %445 = vmatpush3.bf16.msra.mxu1 %v481_v10 }
  0xd9   :  { %v95_v14 = vpop.f32.mrb[0].mxu0 }
  0xda   :  { %v96_v15 = vadd.f32 %v382_v13, %v95_v14  ;;  %v428_v16 = vpop.f32.mrb[1].mxu0 }
  0xdb   :  { %v98_v17 = vpop.f32.mrb[2].mxu0 }
  0xdc   :  { %v99_v18 = vadd.f32 %v382_v13, %v98_v17  ;;  %v429_v19 = vpop.f32.mrb[3].mxu0  ;;  %v102_v20 = vmax.f32 %v96_v15, 0.0 }
  0xde   :  { %v103_v21 = vmax.f32 %v99_v18, 0.0 }
  0xe0   :  { %v104_v22 = vpack.c.bf16 %v103_v21, %v102_v20 }
  0xe2   :  { %447 = vmatmul.mubr.bf16.vlgmr.msra.gmra.mrb[0].mxu1 %v104_v22 }
 0x1b5   :  { %v210_v26 = vpop.f32.mrb[0].mxu1 }
 0x1b6   :  { %v211_v27 = vadd.f32 %v386_v25, %v210_v26  ;;  %v448_v28 = vpop.f32.mrb[1].mxu1 }
 0x1b7   :  { %v213_v29 = vpop.f32.mrb[2].mxu1 }
 0x1b8   :  { %v214_v30 = vadd.f32 %v386_v25, %v213_v29  ;;  %v449_v31 = vpop.f32.mrb[3].mxu1  ;;  %v217_v32 = vmax.f32 %v211_v27, 0.0 }
 0x1ba   :  { %v218_v33 = vmax.f32 %v214_v30, 0.0 }
 0x1bc   :  { %v219_v34 = vpack.c.bf16 %v218_v33, %v217_v32 }
 0x1be   :  { %459 = vmatmul.mubr.msk.bf16.vlgmr.msra.gmra.mrb[4].mxu0 %vm259_vm2, %v219_v34 }
 0x1bf   :  { %466 = vmatprep.mubr.msk.bf16.mxu0 %vm489_vm0, %v488_v0  ;;  %463 = vmatpush3.bf16.msra.mxu0 %v486_v35 }
 0x1c0   :  { %464 = vmatprep.subr.bf16.mxu0 %v488_v0 }
 0x1c3   :  { %465 = vmatpush3.bf16.msra.mxu0 %v487_v36 }
 0x291   :  { %v297_v39 = vpop.f32.mrb[4].mxu0 }
 0x292   :  { %v298_v40 = vadd.f32 %v395_v38, %v297_v39  ;;  %v460_v41 = vpop.f32.mrb[5].mxu0 }
 0x293   :  { %v300_v42 = vpop.f32.mrb[6].mxu0 }
 0x294   :  { %v301_v43 = vadd.f32 %v395_v38, %v300_v42  ;;  %v461_v44 = vpop.f32.mrb[7].mxu0  ;;  %v304_v45 = vmax.f32 %v298_v40, 0.0 }
 0x296   :  { %v305_v46 = vmax.f32 %v301_v43, 0.0 }
 0x298   :  { %v306_v47 = vpack.c.bf16 %v305_v46, %v304_v45 }
 0x29a   :  { %467 = vmatmul.mubr.msk.bf16.vlgmr.msra.gmra.mrb[8].mxu0 %vm330_vm3, %v306_v47 }
 0x36d   :  { %v368_v49 = vpop.f32.mrb[8].mxu0 }
 0x36e   :  { %v369_v50 = vadd.f32 %v401_v48, %v368_v49  ;;  %v468_v51 = vpop.f32.mrb[9].mxu0 }
 0x36f   :  { %v371_v52 = vpop.f32.mrb[10].mxu0 }
 0x370   :  { %376 = vst.msk [vmem:[%s638_s9] sm:$0xff] %vm375_vm4, %v369_v50  ;;  %v372_v53 = vadd.f32 %v401_v48, %v371_v52  ;;  %v469_v54 = vpop.f32.mrb[11].mxu0 }
 0x372   :  { %377 = vst.msk [vmem:[%s638_s9 + $0x8] sm:$0xff] %vm375_vm4, %v372_v53 }

</bundles_post_ra>
